<compile_context>
chip_gen: v7x
topology: tpu7x:2x2x1
jax: 0.10.0
libtpu: 0.0.40
codegen_flags: <defaults>
</compile_context>

<pallas_src>
import functools

import jax
import jax.numpy as jnp
from jax.experimental import pallas as pl
from jax.experimental.pallas import tpu as pltpu

_BIG = 1e30  # sentinel "exclude this class" distance


def _gct_kernel(x_ref, c_ref, cnorm_ref, bias_ref, t_ref,
                loss_ref, corr_ref, hsum_ref, csum_ref,
                *, margin, n_total, matmul_dtype):
    # x_ref    : (TM, D) f32   feature rows for this grid step
    # c_ref    : (C, D)  f32   class centers (resident across the grid)
    # cnorm_ref: (1, C)  f32   ||center_c||^2 (precomputed, resident)
    # bias_ref : (1, C)  f32   0 for classes present in the batch, +BIG otherwise
    # t_ref    : (TM, 1) i32   labels for this row tile
    # loss_ref : (1, 1)  f32   output (written once, at the last grid step)
    # corr_ref : (1, 1)  i32   output (written once, at the last grid step)
    # hsum_ref : (1, 1)  f32   VMEM scratch accumulator (sum of hinge terms)
    # csum_ref : (1, 1)  i32   VMEM scratch accumulator (correct count)
    step = pl.program_id(0)

    @pl.when(step == 0)
    def _init():
        hsum_ref[...] = jnp.zeros_like(hsum_ref)
        csum_ref[...] = jnp.zeros_like(csum_ref)

    x = x_ref[...]                                   # (TM, D) f32
    c = c_ref[...]                                   # (C, D)  f32
    tm = x.shape[0]
    num_classes = c.shape[0]

    # Squared distance of each row to each class center:
    #   dist2[i, k] = ||x_i||^2 + ||c_k||^2 - 2 * x_i . c_k
    x_norm = jnp.sum(x * x, axis=1, keepdims=True)   # (TM, 1)
    if matmul_dtype != jnp.float32:
        x_mm, c_mm = x.astype(matmul_dtype), c.astype(matmul_dtype)
    else:
        x_mm, c_mm = x, c
    cross = jax.lax.dot_general(                     # (TM, C): contract D of both
        x_mm, c_mm, dimension_numbers=(((1,), (1,)), ((), ())),
        preferred_element_type=jnp.float32)
    dist = jnp.sqrt(jnp.maximum(x_norm + cnorm_ref[...] - 2.0 * cross, 1e-12))

    labels = t_ref[...]                              # (TM, 1) i32
    cls = jax.lax.broadcasted_iota(jnp.int32, (tm, num_classes), 1)
    own = cls == labels                              # (TM, C)

    # dist_ap[i] = dist(x_i, center[target_i]);
    # dist_an[i] = min over classes present in the batch and != target_i.
    dist_ap = jnp.sum(jnp.where(own, dist, 0.0), axis=1, keepdims=True)   # (TM,1)
    dist_an = jnp.min(jnp.where(own, jnp.float32(_BIG), dist) + bias_ref[...],
                      axis=1, keepdims=True)                              # (TM,1)

    # Mask rows past N (partial last tile).
    row = step * tm + jax.lax.broadcasted_iota(jnp.int32, (tm, 1), 0)
    valid = row < n_total
    hinge = jnp.where(valid,
                      jnp.maximum(dist_ap - dist_an + jnp.float32(margin), 0.0),
                      0.0)
    corr = (valid & (dist_an >= dist_ap)).astype(jnp.int32)

    hsum_ref[...] += jnp.sum(hinge, axis=0, keepdims=True)
    csum_ref[...] += jnp.sum(corr, axis=0, keepdims=True)

    @pl.when(step == pl.num_programs(0) - 1)
    def _finalize():
        loss_ref[...] = hsum_ref[...] * jnp.float32(1.0 / n_total)
        corr_ref[...] = csum_ref[...]


def global_center_triplet(inputs, targets, center, margin=0.3,
                          block_rows=None, matmul_dtype=jnp.float32):
    """Pallas implementation of GlobalCenterTriplet.forward.

    Returns (loss: f32 scalar, correct: i32 scalar).

    block_rows: row-tile size. 256 is a v5e-safe default; v6e/v7x can go larger
      as long as 2x double-buffered (TM, D) tiles + the resident (C, D) centers
      stay within the per-generation VMEM budget.
    matmul_dtype: set to jnp.bfloat16 on v6e/v7x for higher MXU throughput on
      the cross term (norms / sqrt / hinge stay f32); validate tolerance.
    """
    n, d = inputs.shape
    num_classes, d_c = center.shape
    assert d == d_c, (inputs.shape, center.shape)

    inputs = inputs.astype(jnp.float32)
    center = center.astype(jnp.float32)
    targets = targets.astype(jnp.int32)

    # Row-tile size: multiple of 8 (sublane) or the full extent.
    if block_rows is None:
        block_rows = 256
    if n <= block_rows or n < 8:
        tm = n
    else:
        tm = max(8, (min(block_rows, n) // 8) * 8)
    grid = pl.cdiv(n, tm)

    # Tiny wrapper glue: per-class squared norms and a "+BIG if absent from
    # this batch" bias row (preserves the in-batch min over negatives without
    # materializing the (N, N) distance matrix).
    c_norm = jnp.sum(center * center, axis=1)[None, :]                      # (1, C)
    present = jnp.zeros((num_classes,), jnp.bool_).at[targets].set(True)
    an_bias = jnp.where(present, 0.0, _BIG).astype(jnp.float32)[None, :]    # (1, C)
    t_col = targets.reshape(n, 1)

    kernel = functools.partial(_gct_kernel, margin=float(margin),
                               n_total=int(n), matmul_dtype=matmul_dtype)

    # Scoped-VMEM budget: double-buffered row tiles + resident centers +
    # (TM, C) working set, clamped so it also fits v7x's 64 MiB physical VMEM.
    est = (2 * 2 * (tm * d + tm * 128) * 4            # x + padded label column
           + 2 * (num_classes * d + 2 * 128) * 4       # centers + cnorm/bias rows
           + 6 * tm * max(num_classes, 128) * 4)       # (TM, C) working tiles
    vmem_limit = int(min(max(est + (8 << 20), 16 << 20), 48 << 20))

    loss, correct = pl.pallas_call(
        kernel,
        grid=(grid,),
        in_specs=[
            pl.BlockSpec((tm, d), lambda i: (i, 0)),            # feature rows
            pl.BlockSpec((num_classes, d), lambda i: (0, 0)),    # centers (resident)
            pl.BlockSpec((1, num_classes), lambda i: (0, 0)),    # ||c||^2
            pl.BlockSpec((1, num_classes), lambda i: (0, 0)),    # absent-class bias
            pl.BlockSpec((tm, 1), lambda i: (i, 0)),             # labels
        ],
        out_specs=(
            pl.BlockSpec((1, 1), lambda i: (0, 0)),
            pl.BlockSpec((1, 1), lambda i: (0, 0)),
        ),
        out_shape=(
            jax.ShapeDtypeStruct((1, 1), jnp.float32),
            jax.ShapeDtypeStruct((1, 1), jnp.int32),
        ),
        scratch_shapes=[
            pltpu.VMEM((1, 1), jnp.float32),
            pltpu.VMEM((1, 1), jnp.int32),
        ],
        compiler_params=pltpu.CompilerParams(
            dimension_semantics=("arbitrary",),   # scalar accumulator across row tiles
            vmem_limit_bytes=vmem_limit),
    )(inputs, center, c_norm, an_bias, t_col)

    return loss[0, 0], correct[0, 0]


def _reference(inputs, targets, center, margin=0.3):
    """Pure-JAX reference matching the PyTorch semantics."""
    cn = center[targets]
    dist = (jnp.sum(inputs ** 2, axis=1, keepdims=True)
            + jnp.sum(cn ** 2, axis=1)[None, :]
            - 2.0 * inputs @ cn.T)
    dist = jnp.sqrt(jnp.clip(dist, 1e-12, None))
    same = targets[:, None] == targets[None, :]
    dist_ap = jnp.diagonal(dist)
    dist_an = jnp.min(jnp.where(same, jnp.inf, dist), axis=1)
    loss = jnp.mean(jnp.maximum(dist_ap - dist_an + margin, 0.0))
    correct = jnp.sum(dist_an >= dist_ap)
    return loss, correct


if __name__ == "__main__":
    key = jax.random.PRNGKey(0)
    k_x, k_c = jax.random.split(key)

    n, d, num_classes = 64, 128, 8
    inputs = jax.random.normal(k_x, (n, d), dtype=jnp.float32)
    center = jax.random.normal(k_c, (num_classes, d), dtype=jnp.float32)
    # Deterministic labels; every class is present and every sample has
    # different-label peers in the batch.
    targets = jnp.arange(n, dtype=jnp.int32) % num_classes

    ref_loss, ref_correct = _reference(inputs, targets, center, margin=0.3)

    # Exercise single-block, exact multi-block, and partial-last-block tilings.
    for block_rows in (None, 16, 24):
        loss, correct = global_center_triplet(inputs, targets, center,
                                              margin=0.3, block_rows=block_rows)
        loss = jax.block_until_ready(loss)
        correct = jax.block_until_ready(correct)
        assert jnp.allclose(loss, ref_loss, atol=1e-4, rtol=1e-4), (
            block_rows, loss, ref_loss)
        assert int(correct) == int(ref_correct), (block_rows, correct, ref_correct)

    # bf16 MXU-operand path (v6e/v7x throughput option): looser loss tolerance;
    # the integer "correct" count may flip on near-ties, so it is not asserted.
    loss_bf16, _ = global_center_triplet(inputs, targets, center, margin=0.3,
                                         block_rows=16, matmul_dtype=jnp.bfloat16)
    loss_bf16 = jax.block_until_ready(loss_bf16)
    assert jnp.allclose(loss_bf16, ref_loss, atol=5e-2, rtol=5e-2), (
        loss_bf16, ref_loss)

    print("KERNEL_OK")
</pallas_src>

<mosaic_0001>
module attributes {stable_mosaic.version = 11 : i64} {
  func.func @_gct_kernel(%arg0: i32, %arg1: memref<64x128xf32, #tpu.memory_space<vmem>>, %arg2: memref<8x128xf32, #tpu.memory_space<vmem>>, %arg3: memref<1x8xf32, #tpu.memory_space<vmem>>, %arg4: memref<1x8xf32, #tpu.memory_space<vmem>>, %arg5: memref<64x1xi32, #tpu.memory_space<vmem>>, %arg6: memref<1x1xf32, #tpu.memory_space<vmem>>, %arg7: memref<1x1xi32, #tpu.memory_space<vmem>>, %arg8: memref<1x1xf32, #tpu.memory_space<vmem>>, %arg9: memref<1x1xi32, #tpu.memory_space<vmem>>) attributes {dimension_semantics = [#tpu.dimension_semantics<arbitrary>], iteration_bounds = array<i64: 1>, scalar_prefetch = 0 : i64, scratch_operands = 2 : i64, tpu.core_type = #tpu.core_type<tc>, window_params = [{transform_indices = @transform_0, window_bounds = array<i64: 64, 128>}, {pipeline_mode = #tpu.pipeline_mode<synchronous>, transform_indices = @transform_1, window_bounds = array<i64: 8, 128>}, {pipeline_mode = #tpu.pipeline_mode<synchronous>, transform_indices = @transform_2, window_bounds = array<i64: 1, 8>}, {pipeline_mode = #tpu.pipeline_mode<synchronous>, transform_indices = @transform_3, window_bounds = array<i64: 1, 8>}, {transform_indices = @transform_4, window_bounds = array<i64: 64, 1>}, {pipeline_mode = #tpu.pipeline_mode<synchronous>, transform_indices = @transform_5, window_bounds = array<i64: 1, 1>}, {pipeline_mode = #tpu.pipeline_mode<synchronous>, transform_indices = @transform_6, window_bounds = array<i64: 1, 1>}]} {
    %c0_i32 = arith.constant 0 : i32
    %0 = arith.cmpi eq, %arg0, %c0_i32 : i32
    %1 = arith.extui %0 : i1 to i32
    %c0_i32_0 = arith.constant 0 : i32
    %2 = arith.cmpi ne, %1, %c0_i32_0 : i32
    scf.if %2 {
      %cst_33 = arith.constant 0.000000e+00 : f32
      %63 = vector.broadcast %cst_33 : f32 to vector<1x1xf32>
      %c0_34 = arith.constant 0 : index
      %c0_35 = arith.constant 0 : index
      %64 = vector.load %arg8[%c0_34, %c0_35] : memref<1x1xf32, #tpu.memory_space<vmem>>, vector<1x1xf32>
      tpu.vector_store %arg8[%c0_34, %c0_35], %63 {strides = array<i32>} : memref<1x1xf32, #tpu.memory_space<vmem>>, vector<1x1xf32>,
      %c0_i32_36 = arith.constant 0 : i32
      %65 = vector.broadcast %c0_i32_36 : i32 to vector<1x1xi32>
      %c0_37 = arith.constant 0 : index
      %c0_38 = arith.constant 0 : index
      %66 = vector.load %arg9[%c0_37, %c0_38] : memref<1x1xi32, #tpu.memory_space<vmem>>, vector<1x1xi32>
      tpu.vector_store %arg9[%c0_37, %c0_38], %65 {strides = array<i32>} : memref<1x1xi32, #tpu.memory_space<vmem>>, vector<1x1xi32>,
    } else {
    }
    %c0 = arith.constant 0 : index
    %c0_1 = arith.constant 0 : index
    %3 = vector.load %arg1[%c0, %c0_1] : memref<64x128xf32, #tpu.memory_space<vmem>>, vector<64x128xf32>
    %c0_2 = arith.constant 0 : index
    %c0_3 = arith.constant 0 : index
    %4 = vector.load %arg2[%c0_2, %c0_3] : memref<8x128xf32, #tpu.memory_space<vmem>>, vector<8x128xf32>
    %5 = arith.mulf %3, %3 : vector<64x128xf32>
    %cst = arith.constant dense<0.000000e+00> : vector<64xf32>
    %6 = vector.multi_reduction <add>, %5, %cst [1] : vector<64x128xf32> to vector<64xf32>
    %7 = vector.shape_cast %6 : vector<64xf32> to vector<64x1xf32>
    %cst_4 = arith.constant dense<0.000000e+00> : vector<64x8xf32>
    %8 = tpu.matmul %3, %4, %cst_4 {dimension_numbers = #tpu.dot_dimension_numbers<[1], [1], [0], [0], [0, 0, 1, 0], [], []>} : vector<64x128xf32>, vector<8x128xf32>, vector<64x8xf32> -> vector<64x8xf32>
    %c0_5 = arith.constant 0 : index
    %c0_6 = arith.constant 0 : index
    %9 = vector.load %arg3[%c0_5, %c0_6] : memref<1x8xf32, #tpu.memory_space<vmem>>, vector<1x8xf32>
    %10 = vector.broadcast %7 : vector<64x1xf32> to vector<64x8xf32>
    %11 = vector.broadcast %9 : vector<1x8xf32> to vector<64x8xf32>
    %12 = arith.addf %10, %11 : vector<64x8xf32>
    %cst_7 = arith.constant 2.000000e+00 : f32
    %13 = vector.broadcast %cst_7 : f32 to vector<64x8xf32>
    %14 = arith.mulf %13, %8 : vector<64x8xf32>
    %15 = arith.subf %12, %14 : vector<64x8xf32>
    %cst_8 = arith.constant 9.99999996E-13 : f32
    %16 = vector.broadcast %cst_8 : f32 to vector<64x8xf32>
    %17 = arith.maximumf %15, %16 : vector<64x8xf32>
    %18 = math.sqrt %17 : vector<64x8xf32>
    %c0_9 = arith.constant 0 : index
    %c0_10 = arith.constant 0 : index
    %19 = vector.load %arg5[%c0_9, %c0_10] : memref<64x1xi32, #tpu.memory_space<vmem>>, vector<64x1xi32>
    %20 = tpu.iota {dimensions = array<i32: 1>} : vector<64x8xi32>
    %21 = vector.broadcast %19 : vector<64x1xi32> to vector<64x8xi32>
    %22 = arith.cmpi eq, %20, %21 : vector<64x8xi32>
    %cst_11 = arith.constant 0.000000e+00 : f32
    %23 = vector.broadcast %cst_11 : f32 to vector<64x8xf32>
    %24 = arith.select %22, %18, %23 : vector<64x8xi1>, vector<64x8xf32>
    %cst_12 = arith.constant dense<0.000000e+00> : vector<64xf32>
    %25 = vector.multi_reduction <add>, %24, %cst_12 [1] : vector<64x8xf32> to vector<64xf32>
    %26 = vector.shape_cast %25 : vector<64xf32> to vector<64x1xf32>
    %cst_13 = arith.constant 1.000000e+30 : f32
    %27 = vector.broadcast %cst_13 : f32 to vector<64x8xf32>
    %28 = arith.select %22, %27, %18 : vector<64x8xi1>, vector<64x8xf32>
    %c0_14 = arith.constant 0 : index
    %c0_15 = arith.constant 0 : index
    %29 = vector.load %arg4[%c0_14, %c0_15] : memref<1x8xf32, #tpu.memory_space<vmem>>, vector<1x8xf32>
    %30 = vector.broadcast %29 : vector<1x8xf32> to vector<64x8xf32>
    %31 = arith.addf %28, %30 : vector<64x8xf32>
    %cst_16 = arith.constant dense<0x7F800000> : vector<64xf32>
    %32 = vector.multi_reduction <minimumf>, %31, %cst_16 [1] : vector<64x8xf32> to vector<64xf32>
    %33 = vector.shape_cast %32 : vector<64xf32> to vector<64x1xf32>
    %c64_i32 = arith.constant 64 : i32
    %34 = arith.muli %arg0, %c64_i32 : i32
    %35 = tpu.iota {dimensions = array<i32: 0>} : vector<64x1xi32>
    %36 = vector.broadcast %34 : i32 to vector<64x1xi32>
    %37 = arith.addi %36, %35 : vector<64x1xi32>
    %c64_i32_17 = arith.constant 64 : i32
    %38 = vector.broadcast %c64_i32_17 : i32 to vector<64x1xi32>
    %39 = arith.cmpi slt, %37, %38 : vector<64x1xi32>
    %40 = arith.subf %26, %33 : vector<64x1xf32>
    %cst_18 = arith.constant 3.000000e-01 : f32
    %41 = vector.broadcast %cst_18 : f32 to vector<64x1xf32>
    %42 = arith.addf %40, %41 : vector<64x1xf32>
    %cst_19 = arith.constant 0.000000e+00 : f32
    %43 = vector.broadcast %cst_19 : f32 to vector<64x1xf32>
    %44 = arith.maximumf %42, %43 : vector<64x1xf32>
    %cst_20 = arith.constant 0.000000e+00 : f32
    %45 = vector.broadcast %cst_20 : f32 to vector<64x1xf32>
    %46 = arith.select %39, %44, %45 : vector<64x1xi1>, vector<64x1xf32>
    %47 = arith.cmpf oge, %33, %26 : vector<64x1xf32>
    %48 = arith.andi %39, %47 : vector<64x1xi1>
    %49 = arith.extui %48 : vector<64x1xi1> to vector<64x1xi32>
    %c0_21 = arith.constant 0 : index
    %c0_22 = arith.constant 0 : index
    %50 = vector.load %arg8[%c0_21, %c0_22] : memref<1x1xf32, #tpu.memory_space<vmem>>, vector<1x1xf32>
    %cst_23 = arith.constant dense<0.000000e+00> : vector<1xf32>
    %51 = vector.multi_reduction <add>, %46, %cst_23 [0] : vector<64x1xf32> to vector<1xf32>
    %52 = vector.shape_cast %51 : vector<1xf32> to vector<1x1xf32>
    %53 = arith.addf %50, %52 : vector<1x1xf32>
    %c0_24 = arith.constant 0 : index
    %c0_25 = arith.constant 0 : index
    %54 = vector.load %arg8[%c0_24, %c0_25] : memref<1x1xf32, #tpu.memory_space<vmem>>, vector<1x1xf32>
    tpu.vector_store %arg8[%c0_24, %c0_25], %53 {strides = array<i32>} : memref<1x1xf32, #tpu.memory_space<vmem>>, vector<1x1xf32>,
    %c0_26 = arith.constant 0 : index
    %c0_27 = arith.constant 0 : index
    %55 = vector.load %arg9[%c0_26, %c0_27] : memref<1x1xi32, #tpu.memory_space<vmem>>, vector<1x1xi32>
    %cst_28 = arith.constant dense<0> : vector<1xi32>
    %56 = vector.multi_reduction <add>, %49, %cst_28 [0] : vector<64x1xi32> to vector<1xi32>
    %57 = vector.shape_cast %56 : vector<1xi32> to vector<1x1xi32>
    %58 = arith.addi %55, %57 : vector<1x1xi32>
    %c0_29 = arith.constant 0 : index
    %c0_30 = arith.constant 0 : index
    %59 = vector.load %arg9[%c0_29, %c0_30] : memref<1x1xi32, #tpu.memory_space<vmem>>, vector<1x1xi32>
    tpu.vector_store %arg9[%c0_29, %c0_30], %58 {strides = array<i32>} : memref<1x1xi32, #tpu.memory_space<vmem>>, vector<1x1xi32>,
    %c0_i32_31 = arith.constant 0 : i32
    %60 = arith.cmpi eq, %arg0, %c0_i32_31 : i32
    %61 = arith.extui %60 : i1 to i32
    %c0_i32_32 = arith.constant 0 : i32
    %62 = arith.cmpi ne, %61, %c0_i32_32 : i32
    scf.if %62 {
      %c0_33 = arith.constant 0 : index
      %c0_34 = arith.constant 0 : index
      %63 = vector.load %arg8[%c0_33, %c0_34] : memref<1x1xf32, #tpu.memory_space<vmem>>, vector<1x1xf32>
      %cst_35 = arith.constant 1.562500e-02 : f32
      %64 = vector.broadcast %cst_35 : f32 to vector<1x1xf32>
      %65 = arith.mulf %63, %64 : vector<1x1xf32>
      %c0_36 = arith.constant 0 : index
      %c0_37 = arith.constant 0 : index
      %66 = vector.load %arg6[%c0_36, %c0_37] : memref<1x1xf32, #tpu.memory_space<vmem>>, vector<1x1xf32>
      tpu.vector_store %arg6[%c0_36, %c0_37], %65 {strides = array<i32>} : memref<1x1xf32, #tpu.memory_space<vmem>>, vector<1x1xf32>,
      %c0_38 = arith.constant 0 : index
      %c0_39 = arith.constant 0 : index
      %67 = vector.load %arg9[%c0_38, %c0_39] : memref<1x1xi32, #tpu.memory_space<vmem>>, vector<1x1xi32>
      %c0_40 = arith.constant 0 : index
      %c0_41 = arith.constant 0 : index
      %68 = vector.load %arg7[%c0_40, %c0_41] : memref<1x1xi32, #tpu.memory_space<vmem>>, vector<1x1xi32>
      tpu.vector_store %arg7[%c0_40, %c0_41], %67 {strides = array<i32>} : memref<1x1xi32, #tpu.memory_space<vmem>>, vector<1x1xi32>,
    } else {
    }
    return
  }
  func.func @transform_0(%arg0: i32) -> (i32, i32) {
    %c0_i32 = arith.constant 0 : i32
    %c0_i32_0 = arith.constant 0 : i32
    return %arg0, %c0_i32 : i32, i32
  }
  func.func @transform_1(%arg0: i32) -> (i32, i32) {
    %c0_i32 = arith.constant 0 : i32
    %c0_i32_0 = arith.constant 0 : i32
    %c0_i32_1 = arith.constant 0 : i32
    return %c0_i32, %c0_i32_0 : i32, i32
  }
  func.func @transform_2(%arg0: i32) -> (i32, i32) {
    %c0_i32 = arith.constant 0 : i32
    %c0_i32_0 = arith.constant 0 : i32
    %c0_i32_1 = arith.constant 0 : i32
    return %c0_i32, %c0_i32_0 : i32, i32
  }
  func.func @transform_3(%arg0: i32) -> (i32, i32) {
    %c0_i32 = arith.constant 0 : i32
    %c0_i32_0 = arith.constant 0 : i32
    %c0_i32_1 = arith.constant 0 : i32
    return %c0_i32, %c0_i32_0 : i32, i32
  }
  func.func @transform_4(%arg0: i32) -> (i32, i32) {
    %c0_i32 = arith.constant 0 : i32
    %c0_i32_0 = arith.constant 0 : i32
    return %arg0, %c0_i32 : i32, i32
  }
  func.func @transform_5(%arg0: i32) -> (i32, i32) {
    %c0_i32 = arith.constant 0 : i32
    %c0_i32_0 = arith.constant 0 : i32
    %c0_i32_1 = arith.constant 0 : i32
    return %c0_i32, %c0_i32_0 : i32, i32
  }
  func.func @transform_6(%arg0: i32) -> (i32, i32) {
    %c0_i32 = arith.constant 0 : i32
    %c0_i32_0 = arith.constant 0 : i32
    %c0_i32_1 = arith.constant 0 : i32
    return %c0_i32, %c0_i32_0 : i32, i32
  }
}

</mosaic_0001>

<bundles_post_ra>
// kernel: tpu_custom_call.1
= control target key start
LH: loop header
LB: loop body
LE: loop exit
PB: predicated region body
PF: predicated region fallthrough
CT: control target
= control target key end

     0   :  { %12 = vsyncpa [#allocation5], 0  ;;  %s962_s0 = inlined_call_operand.vmem [shape: f32[64,128], index: 0, kind: input, shape index: {}]   ;;  %s963_s1 = inlined_call_operand.hbm [shape: f32[8,128], index: 1, kind: input, shape index: {}]   ;;  %s964_s2 = inlined_call_operand.vmem [shape: f32[1,8], index: 2, kind: input, shape index: {}]   ;;  %s965_s3 = inlined_call_operand.vmem [shape: f32[1,8], index: 3, kind: input, shape index: {}]   ;;  %s966_s4 = inlined_call_operand.vmem [shape: s32[64,1], index: 4, kind: input, shape index: {}]   ;;  %s967_s5 = inlined_call_operand.hbm [shape: f32[1,1], index: 5, kind: output, shape index: {0}]   ;;  %s968_s6 = inlined_call_operand.hbm [shape: s32[1,1], index: 6, kind: output, shape index: {1}]  }
   0x1   :  { %13 = vsyncpa [#allocation6], 0 }
   0x2   :  { %14 = vsyncpa [#allocation9], 0  ;;  %s673_s21 = smov [#allocation4]   ;;  %s601_s25 = scalar_lea.hbm %s963_s1, 128 }
   0x3   :  { %s23_s22 = sshll.u32 %s673_s21, 4  ;;  %p602_p0 = scmp.ne.s32.totalorder %s963_s1, %s601_s25  ;;  %s24_s22 = int_to_ptr.vmem [resolvable:$true] %s23_s22 }
   0x4   :  { %p605_p1 = scmp.lt.u32.totalorder %s601_s25, %s963_s1 }
   0x6   :  { %p607_p2 = pnand %p605_p1, %p602_p0 }
   0x8   :  { %610 = shalt.err (!%p607_p2)
}
   0x9   :  { %s611_s30 = scalar_lea.vmem %s24_s22, 128  ;;  %p616_p4 = scmp.lt.s32.totalorder %s24_s22, %s24_s22 }
   0xa   :  { %p612_p3 = scmp.ne.s32.totalorder %s24_s22, %s611_s30  ;;  %p617_p5 = scmp.lt.s32.totalorder %s611_s30, %s611_s30 }
   0xc   :  { %p618_p6 = por %p617_p5, %p616_p4 }
   0xe   :  { %p619_p7 = pnand %p618_p6, %p612_p3 }
  0x10   :  { %622 = shalt.err (!%p619_p7)
}
  0x11   :  { %26 = dma.hbm_to_vmem [thread:$0]  %s963_s1, 128, %s24_s22, [#allocation5]  }
  0x12   :  { %667 = dma.done.wait [#allocation5], 128  }
  0x13   :  { %668 = vsyncadd [#allocation5], 4294967168  ;;  %v674_v0 = vmov 0   ;;  %v51_v1 = vld [vmem:[#allocation4] sm:$0xff]  ;;  %v45_v4 = vld [vmem:[%s962_s0 + $0x10] sm:$0xff]  ;;  %vm326_vm4 = vcmask 64512  }
  0x14   :  { %584 = vset.pattern.permute.xlu1 %v674_v0  ;;  %583 = vset.pattern.permute.xlu0 %v674_v0  ;;  %v43_v2 = vld [vmem:[%s962_s0] sm:$0xff]  ;;  %v44_v6 = vld [vmem:[%s962_s0 + $0x8] sm:$0xff]  ;;  %v54_v8 = vmul.f32 %v45_v4, %v45_v4  ;;  %v49_v9 = vld [vmem:[%s962_s0 + $0x30] sm:$0xff]  ;;  %s677_s17 = smov [#allocation7]  }
  0x15   :  { %v47_v3 = vld [vmem:[%s962_s0 + $0x20] sm:$0xff]  ;;  %562 = vmatprep.subr.mxu0 %v51_v1  ;;  %576 = vmatprep.subr.mxu1 %v51_v1  ;;  %v52_v5 = vmul.f32 %v43_v2, %v43_v2  ;;  %v48_v7 = vld [vmem:[%s962_s0 + $0x28] sm:$0xff]  ;;  %v46_v10 = vld [vmem:[%s962_s0 + $0x18] sm:$0xff]  ;;  %v53_v12 = vmul.f32 %v44_v6, %v44_v6  ;;  %v58_v17 = vmul.f32 %v49_v9, %v49_v9  ;;  %s528_s18 = sshll.u32 %s677_s17, 4  ;;  %s928_s18 = int_to_ptr.vmem [resolvable:$true] %s528_s18 }
  0x16   :  { %563 = vmatpush3.xpose.msra.mxu0 %v51_v1  ;;  %577 = vmatpush3.xpose.msra.mxu1 %v51_v1  ;;  %v55_v11 = vmul.f32 %v46_v10, %v46_v10  ;;  %v50_v13 = vld [vmem:[%s962_s0 + $0x38] sm:$0xff]  ;;  %v57_v14 = vmul.f32 %v48_v7, %v48_v7  ;;  %v56_v15 = vmul.f32 %v47_v3, %v47_v3  ;;  %v277_v18 = vld [vmem:[%s966_s4 + $0x8] sm:$0xff]  ;;  %v278_v19 = vld [vmem:[%s966_s4 + $0x10] sm:$0xff] }
  0x17   :  { %564 = vmatprep.mubr.f32.mxu0 %v43_v2  ;;  %570 = vmatprep.mubr.f32.mxu1 %v47_v3  ;;  %v59_v16 = vmul.f32 %v50_v13, %v50_v13  ;;  %v276_v20 = vld [vmem:[%s966_s4] sm:$0xff]  ;;  %v279_v21 = vld [vmem:[%s966_s4 + $0x18] sm:$0xff]  ;;  %v281_v23 = vld [vmem:[%s966_s4 + $0x28] sm:$0xff] }
  0x18   :  { %64 = vadd.xlane.f32.xlu1 %v54_v8  ;;  %60 = vadd.xlane.f32.xlu0 %v52_v5  ;;  %v280_v22 = vld [vmem:[%s966_s4 + $0x20] sm:$0xff]  ;;  %v282_v24 = vld [vmem:[%s966_s4 + $0x30] sm:$0xff]  ;;  %v283_v25 = vld [vmem:[%s966_s4 + $0x38] sm:$0xff] }
  0x19   :  { %565 = vmatmul.mubr.f32.vlgmr.msra.gmra.mrb[0].mxu0 %v44_v6  ;;  %571 = vmatmul.mubr.f32.vlgmr.msra.gmra.mrb[0].mxu1 %v48_v7  ;;  %v551_v33 = vld [vmem:[%s964_s2] ss:$0 sm:$0xff] }
  0x1a   :  { %567 = vmatprep.mubr.f32.mxu0 %v45_v4  ;;  %573 = vmatprep.mubr.f32.mxu1 %v49_v9 }
  0x1c   :  { %66 = vadd.xlane.f32.xlu1 %v55_v11  ;;  %62 = vadd.xlane.f32.xlu0 %v53_v12  ;;  %v284_v11 = vlaneseq }
  0x1d   :  { %568 = vmatmul.mubr.f32.gmra.mrb[2].mxu0 %v46_v10  ;;  %574 = vmatmul.mubr.f32.gmra.mrb[2].mxu1 %v50_v13 }
  0x20   :  { %70 = vadd.xlane.f32.xlu1 %v57_v14  ;;  %68 = vadd.xlane.f32.xlu0 %v56_v15  ;;  %v798_v15 = vand.u32 127, %v284_v11 }
  0x24   :  { %74 = vadd.xlane.f32.xlu1 %v59_v16  ;;  %72 = vadd.xlane.f32.xlu0 %v58_v17 }
  0x35   :  { %290 = vperm.xlu1 %584, %v277_v18  }
  0x39   :  { %293 = vperm.xlu1 %584, %v278_v19  }
  0x3a   :  { %287 = vperm.xlu0 %583, %v276_v20  }
  0x3d   :  { %296 = vperm.xlu1 %584, %v279_v21  }
  0x41   :  { %299 = vperm.xlu1 %584, %v280_v22  }
  0x45   :  { %302 = vperm.xlu1 %584, %v281_v23  }
  0x49   :  { %305 = vperm.xlu1 %584, %v282_v24  }
  0x4d   :  { %308 = vperm.xlu1 %584, %v283_v25  }
  0xa5   :  { %v65_v26 = vpop.xlane.xlu1 %64  ;;  %v61_v28 = vpop.xlane.xlu0 %60 }
  0xa6   :  { %v188_v40 = vadd.f32 %v551_v33, %v61_v28  ;;  %v190_v58 = vadd.f32 %v551_v33, %v65_v26 }
  0xa9   :  { %v67_v27 = vpop.xlane.xlu1 %66  ;;  %v63_v30 = vpop.xlane.xlu0 %62 }
  0xaa   :  { %v189_v34 = vadd.f32 %v551_v33, %v63_v30  ;;  %v191_v53 = vadd.f32 %v551_v33, %v67_v27 }
  0xad   :  { %v71_v29 = vpop.xlane.xlu1 %70  ;;  %v69_v32 = vpop.xlane.xlu0 %68 }
  0xae   :  { %v192_v43 = vadd.f32 %v551_v33, %v69_v32  ;;  %v193_v44 = vadd.f32 %v551_v33, %v71_v29 }
  0xb1   :  { %v75_v31 = vpop.xlane.xlu1 %74  ;;  %v73_v47 = vpop.xlane.xlu0 %72 }
  0xb2   :  { %v194_v60 = vadd.f32 %v551_v33, %v73_v47  ;;  %v195_v5 = vadd.f32 %v551_v33, %v75_v31  ;;  %v819_v33 = vld [vmem:[%s965_s3] ss:$0 sm:$0xff]  ;;  %s676_s3 = smov [#allocation8]  }
  0xb3   :  { %s538_s16 = sshll.u32 %s676_s3, 4  ;;  %s539_s16 = int_to_ptr.vmem [resolvable:$true] %s538_s16 }
  0xb4   :  { %s623_s19 = scalar_lea.vmem %s539_s16, 16  ;;  %s627_s20 = scalar_lea.vmem %s539_s16, 32 }
  0xb5   :  { %v778_v45 = vpop.permute.xlu1 %290  ;;  %p624_p8 = scmp.ne.s32.totalorder %s539_s16, %s623_s19  ;;  %p628_p9 = scmp.lt.s32.totalorder %s539_s16, %s539_s16 }
  0xb6   :  { %vm311_vm2 = vcmp.eq.s32.totalorder %v798_v15, %v778_v45  ;;  %p629_p10 = scmp.lt.s32.totalorder %s627_s20, %s623_s19 }
  0xb8   :  { %p630_p11 = por %p629_p10, %p628_p9 }
  0xb9   :  { %v780_v2 = vpop.permute.xlu1 %293  ;;  %v288_v16 = vpop.permute.xlu0 %287 }
  0xba   :  { %vm310_vm1 = vcmp.eq.s32.totalorder %v798_v15, %v288_v16  ;;  %p631_p12 = pnand %p630_p11, %p624_p8 }
  0xbd   :  { %v792_v13 = vpop.permute.xlu1 %296 }
  0xbe   :  { %vm313_vm6 = vcmp.eq.s32.totalorder %v798_v15, %v792_v13 }
  0xc1   :  { %v300_v22 = vpop.permute.xlu1 %299 }
  0xc2   :  { %vm314_vm5 = vcmp.eq.s32.totalorder %v798_v15, %v300_v22 }
  0xec   :  { %v566_v35 = vpop.f32.mrb[0].mxu0  ;;  %v572_v36 = vpop.f32.mrb[0].mxu1 }
  0xed   :  { %v197_v37 = vmul.f32 2.0, %v566_v35  ;;  %v162_v38 = vpop.f32.mrb[1].mxu1  ;;  %v142_v39 = vpop.f32.mrb[1].mxu0  ;;  %v201_v46 = vmul.f32 2.0, %v572_v36 }
  0xee   :  { %v200_v41 = vmul.f32 2.0, %v162_v38  ;;  %v196_v42 = vmul.f32 2.0, %v142_v39 }
  0xef   :  { %v205_v48 = vsub.f32 %v189_v34, %v197_v37  ;;  %v209_v59 = vsub.f32 %v193_v44, %v201_v46 }
  0xf0   :  { %v204_v49 = vsub.f32 %v188_v40, %v196_v42  ;;  %v569_v50 = vpop.f32.mrb[2].mxu0  ;;  %v575_v51 = vpop.f32.mrb[2].mxu1  ;;  %v208_v55 = vsub.f32 %v192_v43, %v200_v41 }
  0xf1   :  { %v199_v52 = vmul.f32 2.0, %v569_v50  ;;  %v172_v56 = vpop.f32.mrb[3].mxu1  ;;  %v152_v57 = vpop.f32.mrb[3].mxu0  ;;  %v213_v61 = vmax.f32 %v205_v48, 1e-12  ;;  %v203_v7 = vmul.f32 2.0, %v575_v51 }
  0xf2   :  { %v212_v54 = vmax.f32 %v204_v49, 1e-12  ;;  %v202_v63 = vmul.f32 2.0, %v172_v56  ;;  %v198_v1 = vmul.f32 2.0, %v152_v57  ;;  %v782_v3 = vmax.f32 %v208_v55, 1e-12 }
  0xf3   :  { %v207_v62 = vsub.f32 %v191_v53, %v199_v52  ;;  %v784_v6 = vmax.f32 %v209_v59, 1e-12  ;;  %v211_v12 = vsub.f32 %v195_v5, %v203_v7  ;;  %vm229_vm8 = vcmp.eq.f32.partialorder %v213_v61, inf }
  0xf4   :  { %585 = vrsqrt.f32 %v212_v54  ;;  %v206_v4 = vsub.f32 %v190_v58, %v198_v1  ;;  %v210_v9 = vsub.f32 %v194_v60, %v202_v63  ;;  %vm222_vm0 = vcmp.eq.f32.partialorder %v212_v54, inf }
  0xf5   :  { %v786_v8 = vmax.f32 %v207_v62, 1e-12  ;;  %587 = vrsqrt.f32 %v213_v61  ;;  %v800_v18 = vmax.f32 %v211_v12, 1e-12  ;;  %v225_v20 = vand.u32 2147483648, %v212_v54 }
  0xf6   :  { %v788_v10 = vmax.f32 %v206_v4, 1e-12  ;;  %589 = vrsqrt.f32 %v782_v3  ;;  %v794_v14 = vmax.f32 %v210_v9, 1e-12  ;;  %vm224_vm3 = vcmp.eq.f32.partialorder %v212_v54, 0.0 }
  0xf7   :  { %591 = vrsqrt.f32 %v784_v6  ;;  %vm257_vm7 = vcmp.eq.f32.partialorder %v784_v6, inf  ;;  %vm231_vm9 = vcmp.eq.f32.partialorder %v213_v61, 0.0  ;;  %v232_v27 = vand.u32 2147483648, %v213_v61 }
  0xf8   :  { %593 = vrsqrt.f32 %v786_v8  ;;  %vm250_vm10 = vcmp.eq.f32.partialorder %v782_v3, inf  ;;  %vm252_vm11 = vcmp.eq.f32.partialorder %v782_v3, 0.0  ;;  %v253_v36 = vand.u32 2147483648, %v782_v3 }
  0xf9   :  { %595 = vrsqrt.f32 %v788_v10  ;;  %vm243_vm12 = vcmp.eq.f32.partialorder %v786_v8, inf  ;;  %vm245_vm13 = vcmp.eq.f32.partialorder %v786_v8, 0.0  ;;  %v246_v52 = vand.u32 2147483648, %v786_v8 }
  0xfa   :  { %597 = vrsqrt.f32 %v794_v14  ;;  %vm236_vm14 = vcmp.eq.f32.partialorder %v788_v10, inf  ;;  %vm238_vm15 = vcmp.eq.f32.partialorder %v788_v10, 0.0  ;;  %v239_v56 = vand.u32 2147483648, %v788_v10 }
  0xfb   :  { %599 = vrsqrt.f32 %v800_v18  ;;  %v260_v4 = vand.u32 2147483648, %v784_v6 }
  0xfe   :  { %v586_v17 = vpop.eup %585 }
  0xff   :  { %v221_v19 = vmul.f32 %v586_v17, %v212_v54  ;;  %v588_v21 = vpop.eup %587  ;;  %v267_v17 = vand.u32 2147483648, %v794_v14 }
 0x100   :  { %v228_v25 = vmul.f32 %v588_v21, %v213_v61  ;;  %v590_v26 = vpop.eup %589 }
 0x101   :  { %v223_v23 = vsel %vm222_vm0, %v212_v54, %v221_v19  ;;  %v592_v29 = vpop.eup %591  ;;  %v249_v32 = vmul.f32 %v590_v26, %v782_v3  ;;  %v303_v54 = vpop.permute.xlu1 %302  ;;  %vm312_vm0 = vcmp.eq.s32.totalorder %v798_v15, %v780_v2 }
 0x102   :  { %v226_v24 = vsel %vm224_vm3, %v225_v20, %v223_v23  ;;  %v230_v30 = vsel %vm229_vm8, %v213_v61, %v228_v25  ;;  %v594_v34 = vpop.eup %593  ;;  %v256_v41 = vmul.f32 %v592_v29, %v784_v6  ;;  %vm315_vm3 = vcmp.eq.s32.totalorder %v798_v15, %v303_v54 }
 0x103   :  { %v318_v28 = vsel %vm310_vm1, %v226_v24, 0.0  ;;  %v233_v35 = vsel %vm231_vm9, %v232_v27, %v230_v30  ;;  %v596_v37 = vpop.eup %595  ;;  %v251_v39 = vsel %vm250_vm10, %v782_v3, %v249_v32  ;;  %v351_v46 = vsel %vm310_vm1, 1e+30, %v226_v24 }
 0x104   :  { %v327_v31 = vsel %vm326_vm4, %v318_v28, 0.0  ;;  %v319_v38 = vsel %vm311_vm2, %v233_v35, 0.0  ;;  %v352_v40 = vsel %vm311_vm2, 1e+30, %v233_v35  ;;  %v254_v43 = vsel %vm252_vm11, %v253_v36, %v251_v39  ;;  %v598_v49 = vpop.eup %597 }
 0x105   :  { %328 = vadd.xlane.f32.xlu1 %v327_v31  ;;  %v330_v42 = vsel %vm326_vm4, %v319_v38, 0.0  ;;  %v367_v44 = vadd.f32 %v819_v33, %v352_v40  ;;  %v322_v47 = vsel %vm314_vm5, %v254_v43, 0.0  ;;  %v355_v45 = vsel %vm314_vm5, 1e+30, %v254_v43  ;;  %v600_v61 = vpop.eup %599  ;;  %v306_v11 = vpop.permute.xlu1 %305 }
 0x106   :  { %331 = vadd.xlane.f32.xlu0 %v330_v42  ;;  %v242_v48 = vmul.f32 %v594_v34, %v786_v8  ;;  %v370_v51 = vadd.f32 %v819_v33, %v355_v45  ;;  %v235_v53 = vmul.f32 %v596_v37, %v788_v10  ;;  %v339_v57 = vsel %vm326_vm4, %v322_v47, 0.0 }
 0x107   :  { %v377_v50 = vsel %vm326_vm4, %v367_v44, inf  ;;  %v366_v58 = vadd.f32 %v819_v33, %v351_v46  ;;  %v258_v62 = vsel %vm257_vm7, %v784_v6, %v256_v41  ;;  %v263_v63 = vmul.f32 %v598_v49, %v794_v14 }
 0x108   :  { %v244_v55 = vsel %vm243_vm12, %v786_v8, %v242_v48  ;;  %v237_v60 = vsel %vm236_vm14, %v788_v10, %v235_v53  ;;  %v386_v5 = vsel %vm326_vm4, %v370_v51, inf  ;;  %vm259_vm1 = vcmp.eq.f32.partialorder %v784_v6, 0.0 }
 0x109   :  { %378 = vmin.xlane.f32.xlu1 %v377_v50  ;;  %v247_v59 = vsel %vm245_vm13, %v246_v52, %v244_v55  ;;  %v240_v3 = vsel %vm238_vm15, %v239_v56, %v237_v60  ;;  %v261_v9 = vsel %vm259_vm1, %v260_v4, %v258_v62  ;;  %vm264_vm2 = vcmp.eq.f32.partialorder %v794_v14, inf  ;;  %v309_v28 = vpop.permute.xlu1 %308 }
 0x10a   :  { %340 = vadd.xlane.f32.xlu0 %v339_v57  ;;  %v354_v1 = vsel %vm313_vm6, 1e+30, %v247_v59  ;;  %v353_v8 = vsel %vm312_vm0, 1e+30, %v240_v3  ;;  %v374_v10 = vsel %vm326_vm4, %v366_v58, inf  ;;  %v265_v12 = vsel %vm264_vm2, %v794_v14, %v263_v63 }
 0x10b   :  { %v369_v7 = vadd.f32 %v819_v33, %v354_v1  ;;  %v270_v16 = vmul.f32 %v600_v61, %v800_v18  ;;  %v321_v6 = vsel %vm313_vm6, %v247_v59, 0.0  ;;  %v368_v20 = vadd.f32 %v819_v33, %v353_v8 }
 0x10c   :  { %v356_v21 = vsel %vm315_vm3, 1e+30, %v261_v9  ;;  %vm266_vm5 = vcmp.eq.f32.partialorder %v794_v14, 0.0  ;;  %vm271_vm7 = vcmp.eq.f32.partialorder %v800_v18, inf  ;;  %v336_v13 = vsel %vm326_vm4, %v321_v6, 0.0 }
 0x10d   :  { %387 = vmin.xlane.f32.xlu1 %v386_v5  ;;  %v383_v19 = vsel %vm326_vm4, %v369_v7, inf  ;;  %v268_v22 = vsel %vm266_vm5, %v267_v17, %v265_v12  ;;  %v272_v23 = vsel %vm271_vm7, %v800_v18, %v270_v16  ;;  %v320_v24 = vsel %vm312_vm0, %v240_v3, 0.0 }
 0x10e   :  { %375 = vmin.xlane.f32.xlu0 %v374_v10  ;;  %vm316_vm6 = vcmp.eq.s32.totalorder %v798_v15, %v306_v11  ;;  %v274_v25 = vand.u32 2147483648, %v800_v18  ;;  %v380_v26 = vsel %vm326_vm4, %v368_v20, inf  ;;  %v371_v14 = vadd.f32 %v819_v33, %v356_v21 }
 0x10f   :  { %v357_v27 = vsel %vm316_vm6, 1e+30, %v268_v22  ;;  %vm273_vm8 = vcmp.eq.f32.partialorder %v800_v18, 0.0  ;;  %v333_v30 = vsel %vm326_vm4, %v320_v24, 0.0  ;;  %v323_v2 = vsel %vm315_vm3, %v261_v9, 0.0 }
 0x110   :  { %v275_v29 = vsel %vm273_vm8, %v274_v25, %v272_v23  ;;  %vm317_vm9 = vcmp.eq.s32.totalorder %v798_v15, %v309_v28  ;;  %v389_v31 = vsel %vm326_vm4, %v371_v14, inf  ;;  %v372_v32 = vadd.f32 %v819_v33, %v357_v27 }
 0x111   :  { %384 = vmin.xlane.f32.xlu1 %v383_v19  ;;  %v358_v34 = vsel %vm317_vm9, 1e+30, %v275_v29  ;;  %v342_v35 = vsel %vm326_vm4, %v323_v2, 0.0  ;;  %v324_v18 = vsel %vm316_vm6, %v268_v22, 0.0  ;;  %v325_v39 = vsel %vm317_vm9, %v275_v29, 0.0 }
 0x112   :  { %337 = vadd.xlane.f32.xlu0 %v336_v13  ;;  %v392_v36 = vsel %vm326_vm4, %v372_v32, inf  ;;  %v373_v37 = vadd.f32 %v819_v33, %v358_v34  ;;  %v345_v38 = vsel %vm326_vm4, %v324_v18, 0.0  ;;  %v348_v41 = vsel %vm326_vm4, %v325_v39, 0.0 }
 0x113   :  { %vm40_vm10 = vcmask 0   ;;  %v675_v42 = vmov 0.0  }
 0x114   :  { %v395_v40 = vsel %vm326_vm4, %v373_v37, inf  ;;  %41 = vst.msk [vmem:[#allocation2] sm:$0x1] %vm40_vm10, %v675_v42  ;;  %42 = vst.msk [vmem:[#allocation3] sm:$0x1] %vm40_vm10, %v674_v0 }
 0x115   :  { %381 = vmin.xlane.f32.xlu1 %v380_v26 }
 0x116   :  { %334 = vadd.xlane.f32.xlu0 %v333_v30 }
 0x119   :  { %390 = vmin.xlane.f32.xlu1 %v389_v31 }
 0x11a   :  { %343 = vadd.xlane.f32.xlu0 %v342_v35 }
 0x11d   :  { %393 = vmin.xlane.f32.xlu1 %v392_v36 }
 0x11e   :  { %346 = vadd.xlane.f32.xlu0 %v345_v38 }
 0x121   :  { %396 = vmin.xlane.f32.xlu1 %v395_v40 }
 0x122   :  { %349 = vadd.xlane.f32.xlu0 %v348_v41 }
 0x192   :  { %v329_v15 = vpop.xlane.xlu1 %328 }
 0x193   :  { %v332_v33 = vpop.xlane.xlu0 %331 }
 0x196   :  { %v379_v43 = vpop.xlane.xlu1 %378 }
 0x197   :  { %v341_v44 = vpop.xlane.xlu0 %340  ;;  %v426_v49 = vsub.f32 %v332_v33, %v379_v43  ;;  %vm458_vm11 = vcmp.ge.f32.partialorder %v379_v43, %v332_v33 }
 0x198   :  { %v474_v19 = vsel %vm458_vm11, 1, %v674_v0 }
 0x199   :  { %v434_v53 = vadd.f32 0.3, %v426_v49  ;;  %v481_v49 = vld [vmem:[#allocation2] sm:$0x1] }
 0x19a   :  { %v388_v46 = vpop.xlane.xlu1 %387 }
 0x19b   :  { %v376_v47 = vpop.xlane.xlu0 %375  ;;  %v429_v57 = vsub.f32 %v341_v44, %v388_v46  ;;  %v442_v60 = vmax.f32 %v434_v53, 0.0  ;;  %vm461_vm13 = vcmp.ge.f32.partialorder %v388_v46, %v341_v44 }
 0x19c   :  { %v425_v45 = vsub.f32 %v329_v15, %v376_v47  ;;  %vm457_vm12 = vcmp.ge.f32.partialorder %v376_v47, %v329_v15  ;;  %v477_v24 = vsel %vm461_vm13, 1, %v674_v0 }
 0x19d   :  { %v437_v3 = vadd.f32 0.3, %v429_v57  ;;  %v473_v23 = vsel %vm457_vm12, 1, %v674_v0 }
 0x19e   :  { %v385_v48 = vpop.xlane.xlu1 %384  ;;  %v433_v51 = vadd.f32 0.3, %v425_v45  ;;  %v499_v32 = vadd.s32 %v477_v24, %v473_v23 }
 0x19f   :  { %v338_v50 = vpop.xlane.xlu0 %337  ;;  %v445_v12 = vmax.f32 %v437_v3, 0.0 }
 0x1a0   :  { %v428_v54 = vsub.f32 %v338_v50, %v385_v48  ;;  %v441_v56 = vmax.f32 %v433_v51, 0.0  ;;  %vm460_vm14 = vcmp.ge.f32.partialorder %v385_v48, %v338_v50  ;;  %v498_v50 = vld [vmem:[#allocation3] sm:$0x1] }
 0x1a1   :  { %v476_v30 = vsel %vm460_vm14, 1, %v674_v0 }
 0x1a2   :  { %v382_v52 = vpop.xlane.xlu1 %381  ;;  %v436_v61 = vadd.f32 0.3, %v428_v54  ;;  %v482_v1 = vadd.f32 %v442_v60, %v441_v56 }
 0x1a3   :  { %v335_v55 = vpop.xlane.xlu0 %334 }
 0x1a4   :  { %v427_v58 = vsub.f32 %v335_v55, %v382_v52  ;;  %v444_v8 = vmax.f32 %v436_v61, 0.0  ;;  %vm459_vm0 = vcmp.ge.f32.partialorder %v382_v52, %v335_v55 }
 0x1a5   :  { %v475_v2 = vsel %vm459_vm0, 1, %v674_v0 }
 0x1a6   :  { %v391_v59 = vpop.xlane.xlu1 %390  ;;  %v435_v62 = vadd.f32 0.3, %v427_v58 }
 0x1a7   :  { %v344_v63 = vpop.xlane.xlu0 %343 }
 0x1a8   :  { %v443_v4 = vmax.f32 %v435_v62, 0.0  ;;  %v430_v5 = vsub.f32 %v344_v63, %v391_v59  ;;  %vm462_vm4 = vcmp.ge.f32.partialorder %v391_v59, %v344_v63 }
 0x1a9   :  { %v478_v6 = vsel %vm462_vm4, 1, %v674_v0 }
 0x1aa   :  { %v394_v7 = vpop.xlane.xlu1 %393  ;;  %v483_v9 = vadd.f32 %v482_v1, %v443_v4  ;;  %v438_v10 = vadd.f32 0.3, %v430_v5  ;;  %v500_v25 = vadd.s32 %v478_v6, %v474_v19 }
 0x1ab   :  { %v347_v11 = vpop.xlane.xlu0 %346 }
 0x1ac   :  { %v484_v16 = vadd.f32 %v483_v9, %v444_v8  ;;  %v431_v17 = vsub.f32 %v347_v11, %v394_v7  ;;  %vm463_vm15 = vcmp.ge.f32.partialorder %v394_v7, %v347_v11  ;;  %v446_v21 = vmax.f32 %v438_v10, 0.0 }
 0x1ad   :  { %v479_v26 = vsel %vm463_vm15, 1, %v674_v0  ;;  %v503_v36 = vadd.s32 %v500_v25, %v499_v32 }
 0x1ae   :  { %v397_v20 = vpop.xlane.xlu1 %396  ;;  %v485_v22 = vadd.f32 %v484_v16, %v445_v12  ;;  %v439_v13 = vadd.f32 0.3, %v431_v17  ;;  %v501_v34 = vadd.s32 %v479_v26, %v475_v2 }
 0x1af   :  { %v350_v14 = vpop.xlane.xlu0 %349 }
 0x1b0   :  { %v486_v27 = vadd.f32 %v485_v22, %v446_v21  ;;  %v447_v28 = vmax.f32 %v439_v13, 0.0  ;;  %v432_v29 = vsub.f32 %v350_v14, %v397_v20  ;;  %vm464_vm1 = vcmp.ge.f32.partialorder %v397_v20, %v350_v14 }
 0x1b1   :  { %v480_v31 = vsel %vm464_vm1, 1, %v674_v0 }
 0x1b2   :  { %v440_v35 = vadd.f32 0.3, %v432_v29  ;;  %v502_v18 = vadd.s32 %v480_v31, %v476_v30  ;;  %v487_v37 = vadd.f32 %v486_v27, %v447_v28 }
 0x1b4   :  { %v448_v38 = vmax.f32 %v440_v35, 0.0  ;;  %v504_v39 = vadd.s32 %v502_v18, %v501_v34 }
 0x1b6   :  { %v488_v40 = vadd.f32 %v487_v37, %v448_v38  ;;  %v505_v41 = vadd.s32 %v504_v39, %v503_v36 }
 0x1b8   :  { %v489_v42 = vrot.slane %v488_v40, 4  ;;  %v506_v15 = vrot.slane %v505_v41, 4 }
 0x1ba   :  { %v490_v33 = vadd.f32 %v489_v42, %v488_v40  ;;  %v507_v43 = vadd.s32 %v506_v15, %v505_v41 }
 0x1bc   :  { %v491_v44 = vrot.slane %v490_v33, 2  ;;  %v508_v46 = vrot.slane %v507_v43, 2 }
 0x1be   :  { %v492_v47 = vadd.f32 %v491_v44, %v490_v33  ;;  %v509_v45 = vadd.s32 %v508_v46, %v507_v43 }
 0x1c0   :  { %v493_v48 = vrot.slane %v492_v47, 1  ;;  %v510_v0 = vrot.slane %v509_v45, 1 }
 0x1c2   :  { %v494_v51 = vadd.f32 %v493_v48, %v492_v47  ;;  %v511_v52 = vadd.s32 %v510_v0, %v509_v45 }
 0x1c4   :  { %v495_v53 = vadd.f32 %v494_v51, %v481_v49  ;;  %v512_v54 = vadd.s32 %v511_v52, %v498_v50 }
 0x1c6   :  { %497 = vst.msk [vmem:[#allocation2] sm:$0x1] %vm40_vm10, %v495_v53  ;;  %513 = vst.msk [vmem:[#allocation3] sm:$0x1] %vm40_vm10, %v512_v54 }
 0x1cd   :  { %v517_v55 = vld [vmem:[#allocation2] sm:$0x1]  ;;  %v520_v56 = vld [vmem:[#allocation3] sm:$0x1] }
 0x1ce   :  { %v518_v57 = vmul.f32 0.015625, %v517_v55  ;;  %521 = vst.msk [vmem:[#allocation8] sm:$0x1] %vm40_vm10, %v520_v56 }
 0x1cf   :  { %634 = shalt.err (!%p631_p12)
}
 0x1d0   :  { %s635_s23 = scalar_lea.hbm %s968_s6, 16 }
 0x1d1   :  { %p636_p13 = scmp.ne.s32.totalorder %s968_s6, %s635_s23  ;;  %p639_p0 = scmp.lt.u32.totalorder %s635_s23, %s968_s6 }
 0x1d3   :  { %p641_p1 = pnand %p639_p0, %p636_p13 }
 0x1d5   :  { %644 = shalt.err (!%p641_p1)
}
 0x1d6   :  { %541 = dma.vmem_to_hbm [thread:$0]  %s539_s16, 16, %s968_s6, [#allocation9]   ;;  %519 = vst.msk [vmem:[#allocation7] sm:$0x1] %vm40_vm10, %v518_v57 }
 0x1d7   :  { %s645_s29 = scalar_lea.vmem %s928_s18, 16  ;;  %s649_s30 = scalar_lea.vmem %s928_s18, 32 }
 0x1d8   :  { %p646_p2 = scmp.ne.s32.totalorder %s928_s18, %s645_s29  ;;  %p650_p3 = scmp.lt.s32.totalorder %s928_s18, %s928_s18 }
 0x1d9   :  { %p651_p4 = scmp.lt.s32.totalorder %s649_s30, %s645_s29 }
 0x1db   :  { %p652_p5 = por %p651_p4, %p650_p3 }
 0x1dd   :  { %p653_p6 = pnand %p652_p5, %p646_p2 }
 0x1df   :  { %656 = shalt.err (!%p653_p6)
}
 0x1e0   :  { %s657_s9 = scalar_lea.hbm %s967_s5, 16 }
 0x1e1   :  { %p658_p7 = scmp.ne.s32.totalorder %s967_s5, %s657_s9  ;;  %p661_p8 = scmp.lt.u32.totalorder %s657_s9, %s967_s5 }
 0x1e3   :  { %p663_p9 = pnand %p661_p8, %p658_p7 }
 0x1e5   :  { %666 = shalt.err (!%p663_p9)
}
 0x1e6   :  { %531 = dma.vmem_to_hbm [thread:$0]  %s928_s18, 16, %s967_s5, [#allocation6]  }
 0x1e7   :  { %669 = dma.done.wait [#allocation6], 16  }
 0x1e8   :  { %670 = vsyncadd [#allocation6], 4294967280 }
 0x1e9   :  { %671 = dma.done.wait [#allocation9], 16  }
 0x1ea   :  { %672 = vsyncadd [#allocation9], 4294967280 }
 0x1eb   :  { %548 = vsyncpa [#allocation5], 1 }
 0x1ec   :  { %549 = vsyncpa [#allocation6], 1 }
 0x1ed   :  { %550 = vsyncpa [#allocation9], 1 }

</bundles_post_ra>
